<compile_context>
chip_gen: v7x
topology: tpu7x:2x2x1
jax: 0.10.0
libtpu: 0.0.40
codegen_flags: <defaults>
</compile_context>

<pallas_src>
import functools

import jax
import jax.numpy as jnp
from jax.experimental import pallas as pl
from jax.experimental.pallas import tpu as pltpu


LANE = 128
SUBLANE_BF16 = 16  # bf16 packs 2 rows/sublane -> keep padded dims 16-aligned


def _round_up(n, m):
    return (n + m - 1) // m * m


def _choose_token_tile(P, max_tile=1024):
    """Token tile for the lane axis: multiple of 128 dividing P, else full P."""
    if P <= max_tile:
        return P
    t = (max_tile // LANE) * LANE
    while t >= LANE:
        if P % t == 0:
            return t
        t -= LANE
    # TODO(synk): ragged P with no 128-multiple divisor -> single full-P tile.
    return P


# ---------------------------------------------------------------------------
# Fused kernel: patch-embed conv (im2col matmul, channel-major) +
# avg_featmap pooling + linear classifier head.
#
#   grid = (B, P // tm)   axis 0: batch ("parallel"), axis 1: token tiles
#                                 ("arbitrary" -> pooling reduction)
#   p_ref  : [1, K_pad, tm]    bf16 im2col patches (K on sublanes, tokens on lanes)
#   wc_ref : [H_sub, K_pad]    bf16 conv weight
#   bc_ref : [H_sub, 1]        f32 conv bias
#   wh_ref : [C_pad, H_sub]    bf16 head weight (transposed), pre-scaled by 1/P
#   bh_ref : [C_pad, 1]        f32 head bias
#   feat_ref  : [1, H_sub, tm] f32 feature tokens, channel-major (lane = tokens)
#   logit_ref : [1, C_pad, 1]  f32 logits column (written on last tile only)
#   acc_ref   : VMEM [H_sub,1] f32 running token sum for this batch element
# ---------------------------------------------------------------------------
def clars_fused_kernel(p_ref, wc_ref, bc_ref, wh_ref, bh_ref,
                       feat_ref, logit_ref, acc_ref):
    j = pl.program_id(1)

    @pl.when(j == 0)
    def _():
        acc_ref[...] = jnp.zeros_like(acc_ref)

    # patch-embed conv as a matmul: bf16 MXU inputs, f32 accumulation.
    # Channel-major output => the NCHW hooked feature needs no post-transpose.
    feat = jnp.dot(wc_ref[...], p_ref[0],
                   preferred_element_type=jnp.float32)        # [H_sub, tm]
    feat = feat + bc_ref[...]                    # f32 bias add (VPU, v5e-safe)
    feat_ref[0] = feat.astype(feat_ref.dtype)    # store only real hidden rows

    # accumulate token sum for 'avg_featmap' pooling (1/P folded into wh)
    acc_ref[...] += jnp.sum(feat, axis=1, keepdims=True)      # [H_sub, 1]

    # classifier head on the last token tile of this batch element
    @pl.when(j == pl.num_programs(1) - 1)
    def _():
        pooled = acc_ref[...].astype(wh_ref.dtype)             # [H_sub, 1]
        logits = jnp.dot(wh_ref[...], pooled,
                         preferred_element_type=jnp.float32)   # [C_pad, 1]
        logit_ref[0] = (logits + bh_ref[...]).astype(logit_ref.dtype)


def clars_fused(patches_t, wc_t, bc, wh_t, bh, *, tm):
    B, K_pad, P = patches_t.shape
    H_sub = wc_t.shape[0]
    C_pad = wh_t.shape[0]
    grid = (B, P // tm)

    return pl.pallas_call(
        clars_fused_kernel,
        out_shape=(
            jax.ShapeDtypeStruct((B, H_sub, P), jnp.float32),   # feature tokens
            jax.ShapeDtypeStruct((B, C_pad, 1), jnp.float32),   # padded logits
        ),
        grid_spec=pltpu.PrefetchScalarGridSpec(
            num_scalar_prefetch=0,
            grid=grid,
            in_specs=[
                pl.BlockSpec((1, K_pad, tm), lambda b, j: (b, 0, j)),
                pl.BlockSpec((H_sub, K_pad), lambda b, j: (0, 0)),
                pl.BlockSpec((H_sub, 1), lambda b, j: (0, 0)),
                pl.BlockSpec((C_pad, H_sub), lambda b, j: (0, 0)),
                pl.BlockSpec((C_pad, 1), lambda b, j: (0, 0)),
            ],
            out_specs=(
                pl.BlockSpec((1, H_sub, tm), lambda b, j: (b, 0, j)),
                pl.BlockSpec((1, C_pad, 1), lambda b, j: (b, 0, 0)),
            ),
            scratch_shapes=[pltpu.VMEM((H_sub, 1), jnp.float32)],
        ),
        compiler_params=pltpu.CompilerParams(
            dimension_semantics=("parallel", "arbitrary")),
    )(patches_t, wc_t, bc, wh_t, bh)


# ---------------------------------------------------------------------------
# CLARS forward (layout/padding glue in plain JAX, compute in Pallas)
# ---------------------------------------------------------------------------
def clars_forward(x_nchw, params, *, patch=8):
    """Returns (feature, logits) exactly like CLARS.forward.

    feature: hooked conv output, NCHW [B, hidden, H//patch, W//patch]
    logits:  [B, num_classes]
    """
    B, Cin, Hi, Wi = x_nchw.shape
    k = patch
    Ph, Pw = Hi // k, Wi // k
    P = Ph * Pw
    hidden = params["conv_w"].shape[0]
    num_classes = params["head_w"].shape[1]
    K = Cin * k * k

    H_sub = _round_up(hidden, SUBLANE_BF16)
    C_pad = _round_up(num_classes, SUBLANE_BF16)
    K_pad = _round_up(K, LANE)

    # im2col for the stride==kernel patch-embed conv, K-major: [B, Cin*k*k, P]
    # TODO(synk): at real backbone scale this reorg should ride the pipeline DMA
    # (BlockSpec index_map over (B, Ph, Pw)) instead of a standalone XLA pass.
    patches_t = (
        x_nchw.reshape(B, Cin, Ph, k, Pw, k)
        .transpose(0, 1, 3, 5, 2, 4)
        .reshape(B, K, P)
    )
    if K_pad != K:
        patches_t = jnp.pad(patches_t, ((0, 0), (0, K_pad - K), (0, 0)))
    patches_t = patches_t.astype(jnp.bfloat16)

    # Weights: contraction (K) dim padded to 128 lanes; hidden / class dims only
    # padded to the bf16 sublane granule (no 4x lane-padding waste on stores).
    wc_t = params["conv_w"].reshape(hidden, K)                          # [H, K]
    wc_t = jnp.pad(wc_t, ((0, H_sub - hidden), (0, K_pad - K)))
    wc_t = wc_t.astype(jnp.bfloat16)
    bc = jnp.pad(params["conv_b"].reshape(hidden, 1),
                 ((0, H_sub - hidden), (0, 0))).astype(jnp.float32)

    # fold the 1/P of 'avg_featmap' mean pooling into the head weights
    wh_t = (params["head_w"] * (1.0 / P)).T                             # [C, H]
    wh_t = jnp.pad(wh_t, ((0, C_pad - num_classes), (0, H_sub - hidden)))
    wh_t = wh_t.astype(jnp.bfloat16)
    bh = jnp.pad(params["head_b"].reshape(num_classes, 1),
                 ((0, C_pad - num_classes), (0, 0))).astype(jnp.float32)

    tm = _choose_token_tile(P)
    feat_hp, logits_p = clars_fused(patches_t, wc_t, bc, wh_t, bh, tm=tm)

    # hooked feature map: [B, hidden, P] -> NCHW is a free (view) reshape
    feature = feat_hp[:, :hidden, :].reshape(B, hidden, Ph, Pw)
    logits = logits_p[:, :num_classes, 0]
    return feature, logits


def init_params(key, *, cin=4, hidden=32, patch=8, num_classes=45):
    k1, k2, k3, k4 = jax.random.split(key, 4)
    fan_in_conv = cin * patch * patch
    fan_in_head = hidden
    return {
        # Kaiming-ish deterministic init (matches init_cfg spirit)
        "conv_w": jax.random.normal(k1, (hidden, cin, patch, patch), jnp.float32)
        * (2.0 / fan_in_conv) ** 0.5,
        "conv_b": jax.random.normal(k2, (hidden,), jnp.float32) * 0.01,
        "head_w": jax.random.normal(k3, (hidden, num_classes), jnp.float32)
        * (1.0 / fan_in_head) ** 0.5,
        "head_b": jax.random.normal(k4, (num_classes,), jnp.float32) * 0.01,
    }


if __name__ == "__main__":
    key = jax.random.PRNGKey(0)
    kx, kp = jax.random.split(key)

    # small shapes consistent with the module: NCHW image input
    B, Cin, H, W = 2, 4, 16, 16
    patch, hidden, num_classes = 8, 32, 45

    x = jax.random.normal(kx, (B, Cin, H, W), jnp.float32)
    params = init_params(kp, cin=Cin, hidden=hidden, patch=patch,
                         num_classes=num_classes)

    fwd = jax.jit(functools.partial(clars_forward, patch=patch))
    feature, logits = fwd(x, params)
    jax.block_until_ready((feature, logits))

    Ph, Pw = H // patch, W // patch
    P = Ph * Pw
    assert feature.shape == (B, hidden, Ph, Pw), feature.shape
    assert logits.shape == (B, num_classes), logits.shape

    # Pure-JAX reference that emulates the kernel's numerics (bf16 MXU inputs,
    # f32 accumulation) so the comparison stays tight.
    hi = jax.lax.Precision.HIGHEST
    patches_t_ref = (
        x.reshape(B, Cin, Ph, patch, Pw, patch)
        .transpose(0, 1, 3, 5, 2, 4)
        .reshape(B, Cin * patch * patch, P)
    )
    p_bf = patches_t_ref.astype(jnp.bfloat16).astype(jnp.float32)
    wc_bf = (params["conv_w"].reshape(hidden, -1)
             .astype(jnp.bfloat16).astype(jnp.float32))
    feat_ref = (jnp.einsum("hk,bkp->bhp", wc_bf, p_bf, precision=hi)
                + params["conv_b"][None, :, None])
    pooled_bf = feat_ref.sum(axis=2).astype(jnp.bfloat16).astype(jnp.float32)
    wh_bf = ((params["head_w"] * (1.0 / P)).T
             .astype(jnp.bfloat16).astype(jnp.float32))
    logits_ref = (jnp.einsum("ch,bh->bc", wh_bf, pooled_bf, precision=hi)
                  + params["head_b"][None, :])
    feat_ref_nchw = feat_ref.reshape(B, hidden, Ph, Pw)

    assert jnp.allclose(feature, feat_ref_nchw, atol=2e-3, rtol=2e-3), \
        float(jnp.max(jnp.abs(feature - feat_ref_nchw)))
    assert jnp.allclose(logits, logits_ref, atol=2e-3, rtol=2e-3), \
        float(jnp.max(jnp.abs(logits - logits_ref)))

    print("KERNEL_OK")
</pallas_src>

<mosaic_0001>
module attributes {stable_mosaic.version = 11 : i64} {
  func.func @clars_fused_kernel(%arg0: i32, %arg1: i32, %arg2: memref<1x256x4xbf16, #tpu.memory_space<vmem>>, %arg3: memref<32x256xbf16, #tpu.memory_space<vmem>>, %arg4: memref<32x1xf32, #tpu.memory_space<vmem>>, %arg5: memref<48x32xbf16, #tpu.memory_space<vmem>>, %arg6: memref<48x1xf32, #tpu.memory_space<vmem>>, %arg7: memref<1x32x4xf32, #tpu.memory_space<vmem>>, %arg8: memref<1x48x1xf32, #tpu.memory_space<vmem>>, %arg9: memref<32x1xf32, #tpu.memory_space<vmem>>) attributes {dimension_semantics = [#tpu.dimension_semantics<parallel>, #tpu.dimension_semantics<arbitrary>], iteration_bounds = array<i64: 2, 1>, scalar_prefetch = 0 : i64, scratch_operands = 1 : i64, tpu.core_type = #tpu.core_type<tc>, window_params = [{transform_indices = @transform_0, window_bounds = array<i64: 1, 256, 4>}, {pipeline_mode = #tpu.pipeline_mode<synchronous>, transform_indices = @transform_1, window_bounds = array<i64: 32, 256>}, {pipeline_mode = #tpu.pipeline_mode<synchronous>, transform_indices = @transform_2, window_bounds = array<i64: 32, 1>}, {pipeline_mode = #tpu.pipeline_mode<synchronous>, transform_indices = @transform_3, window_bounds = array<i64: 48, 32>}, {pipeline_mode = #tpu.pipeline_mode<synchronous>, transform_indices = @transform_4, window_bounds = array<i64: 48, 1>}, {transform_indices = @transform_5, window_bounds = array<i64: 1, 32, 4>}, {transform_indices = @transform_6, window_bounds = array<i64: 1, 48, 1>}]} {
    %c0_i32 = arith.constant 0 : i32
    %0 = arith.cmpi eq, %arg1, %c0_i32 : i32
    %1 = arith.extui %0 : i1 to i32
    %c0_i32_0 = arith.constant 0 : i32
    %2 = arith.cmpi ne, %1, %c0_i32_0 : i32
    scf.if %2 {
      %cst_17 = arith.constant 0.000000e+00 : f32
      %21 = vector.broadcast %cst_17 : f32 to vector<32x1xf32>
      %c0_18 = arith.constant 0 : index
      %c0_19 = arith.constant 0 : index
      %22 = vector.load %arg9[%c0_18, %c0_19] : memref<32x1xf32, #tpu.memory_space<vmem>>, vector<32x1xf32>
      tpu.vector_store %arg9[%c0_18, %c0_19], %21 {strides = array<i32>} : memref<32x1xf32, #tpu.memory_space<vmem>>, vector<32x1xf32>,
    } else {
    }
    %c0 = arith.constant 0 : index
    %c0_1 = arith.constant 0 : index
    %3 = vector.load %arg3[%c0, %c0_1] : memref<32x256xbf16, #tpu.memory_space<vmem>>, vector<32x256xbf16>
    %c0_2 = arith.constant 0 : index
    %c0_3 = arith.constant 0 : index
    %c0_4 = arith.constant 0 : index
    %4 = vector.load %arg2[%c0_2, %c0_3, %c0_4] : memref<1x256x4xbf16, #tpu.memory_space<vmem>>, vector<1x256x4xbf16>
    %5 = vector.shape_cast %4 : vector<1x256x4xbf16> to vector<256x4xbf16>
    %cst = arith.constant dense<0.000000e+00> : vector<32x4xf32>
    %6 = tpu.matmul %3, %5, %cst {dimension_numbers = #tpu.dot_dimension_numbers<[1], [0], [0], [1], [0, 0, 1, 1], [], []>} : vector<32x256xbf16>, vector<256x4xbf16>, vector<32x4xf32> -> vector<32x4xf32>
    %c0_5 = arith.constant 0 : index
    %c0_6 = arith.constant 0 : index
    %7 = vector.load %arg4[%c0_5, %c0_6] : memref<32x1xf32, #tpu.memory_space<vmem>>, vector<32x1xf32>
    %8 = vector.broadcast %7 : vector<32x1xf32> to vector<32x4xf32>
    %9 = arith.addf %6, %8 : vector<32x4xf32>
    %c0_7 = arith.constant 0 : index
    %c0_8 = arith.constant 0 : index
    %c0_9 = arith.constant 0 : index
    %10 = vector.load %arg7[%c0_7, %c0_8, %c0_9] : memref<1x32x4xf32, #tpu.memory_space<vmem>>, vector<1x32x4xf32>
    %11 = vector.shape_cast %10 : vector<1x32x4xf32> to vector<32x4xf32>
    %12 = vector.shape_cast %9 : vector<32x4xf32> to vector<1x32x4xf32>
    tpu.vector_store %arg7[%c0_7, %c0_8, %c0_9], %12 {strides = array<i32>} : memref<1x32x4xf32, #tpu.memory_space<vmem>>, vector<1x32x4xf32>,
    %c0_10 = arith.constant 0 : index
    %c0_11 = arith.constant 0 : index
    %13 = vector.load %arg9[%c0_10, %c0_11] : memref<32x1xf32, #tpu.memory_space<vmem>>, vector<32x1xf32>
    %cst_12 = arith.constant dense<0.000000e+00> : vector<32xf32>
    %14 = vector.multi_reduction <add>, %9, %cst_12 [1] : vector<32x4xf32> to vector<32xf32>
    %15 = vector.shape_cast %14 : vector<32xf32> to vector<32x1xf32>
    %16 = arith.addf %13, %15 : vector<32x1xf32>
    %c0_13 = arith.constant 0 : index
    %c0_14 = arith.constant 0 : index
    %17 = vector.load %arg9[%c0_13, %c0_14] : memref<32x1xf32, #tpu.memory_space<vmem>>, vector<32x1xf32>
    tpu.vector_store %arg9[%c0_13, %c0_14], %16 {strides = array<i32>} : memref<32x1xf32, #tpu.memory_space<vmem>>, vector<32x1xf32>,
    %c0_i32_15 = arith.constant 0 : i32
    %18 = arith.cmpi eq, %arg1, %c0_i32_15 : i32
    %19 = arith.extui %18 : i1 to i32
    %c0_i32_16 = arith.constant 0 : i32
    %20 = arith.cmpi ne, %19, %c0_i32_16 : i32
    scf.if %20 {
      %c0_17 = arith.constant 0 : index
      %c0_18 = arith.constant 0 : index
      %21 = vector.load %arg9[%c0_17, %c0_18] : memref<32x1xf32, #tpu.memory_space<vmem>>, vector<32x1xf32>
      %22 = arith.truncf %21 : vector<32x1xf32> to vector<32x1xbf16>
      %c0_19 = arith.constant 0 : index
      %c0_20 = arith.constant 0 : index
      %23 = vector.load %arg5[%c0_19, %c0_20] : memref<48x32xbf16, #tpu.memory_space<vmem>>, vector<48x32xbf16>
      %cst_21 = arith.constant dense<0.000000e+00> : vector<48x1xf32>
      %24 = tpu.matmul %23, %22, %cst_21 {dimension_numbers = #tpu.dot_dimension_numbers<[1], [0], [0], [1], [0, 0, 1, 1], [], []>} : vector<48x32xbf16>, vector<32x1xbf16>, vector<48x1xf32> -> vector<48x1xf32>
      %c0_22 = arith.constant 0 : index
      %c0_23 = arith.constant 0 : index
      %25 = vector.load %arg6[%c0_22, %c0_23] : memref<48x1xf32, #tpu.memory_space<vmem>>, vector<48x1xf32>
      %26 = arith.addf %24, %25 : vector<48x1xf32>
      %c0_24 = arith.constant 0 : index
      %c0_25 = arith.constant 0 : index
      %c0_26 = arith.constant 0 : index
      %27 = vector.load %arg8[%c0_24, %c0_25, %c0_26] : memref<1x48x1xf32, #tpu.memory_space<vmem>>, vector<1x48x1xf32>
      %28 = vector.shape_cast %27 : vector<1x48x1xf32> to vector<48x1xf32>
      %29 = vector.shape_cast %26 : vector<48x1xf32> to vector<1x48x1xf32>
      tpu.vector_store %arg8[%c0_24, %c0_25, %c0_26], %29 {strides = array<i32>} : memref<1x48x1xf32, #tpu.memory_space<vmem>>, vector<1x48x1xf32>,
    } else {
    }
    return
  }
  func.func @transform_0(%arg0: i32, %arg1: i32) -> (i32, i32, i32) {
    %c0_i32 = arith.constant 0 : i32
    %c0_i32_0 = arith.constant 0 : i32
    return %arg0, %c0_i32, %arg1 : i32, i32, i32
  }
  func.func @transform_1(%arg0: i32, %arg1: i32) -> (i32, i32) {
    %c0_i32 = arith.constant 0 : i32
    %c0_i32_0 = arith.constant 0 : i32
    %c0_i32_1 = arith.constant 0 : i32
    return %c0_i32, %c0_i32_0 : i32, i32
  }
  func.func @transform_2(%arg0: i32, %arg1: i32) -> (i32, i32) {
    %c0_i32 = arith.constant 0 : i32
    %c0_i32_0 = arith.constant 0 : i32
    %c0_i32_1 = arith.constant 0 : i32
    return %c0_i32, %c0_i32_0 : i32, i32
  }
  func.func @transform_3(%arg0: i32, %arg1: i32) -> (i32, i32) {
    %c0_i32 = arith.constant 0 : i32
    %c0_i32_0 = arith.constant 0 : i32
    %c0_i32_1 = arith.constant 0 : i32
    return %c0_i32, %c0_i32_0 : i32, i32
  }
  func.func @transform_4(%arg0: i32, %arg1: i32) -> (i32, i32) {
    %c0_i32 = arith.constant 0 : i32
    %c0_i32_0 = arith.constant 0 : i32
    %c0_i32_1 = arith.constant 0 : i32
    return %c0_i32, %c0_i32_0 : i32, i32
  }
  func.func @transform_5(%arg0: i32, %arg1: i32) -> (i32, i32, i32) {
    %c0_i32 = arith.constant 0 : i32
    %c0_i32_0 = arith.constant 0 : i32
    return %arg0, %c0_i32, %arg1 : i32, i32, i32
  }
  func.func @transform_6(%arg0: i32, %arg1: i32) -> (i32, i32, i32) {
    %c0_i32 = arith.constant 0 : i32
    %c0_i32_0 = arith.constant 0 : i32
    %c0_i32_1 = arith.constant 0 : i32
    return %arg0, %c0_i32, %c0_i32_0 : i32, i32, i32
  }
}

</mosaic_0001>

<bundles_post_ra>
// kernel: clars_forward.1
= control target key start
LH: loop header
LB: loop body
LE: loop exit
PB: predicated region body
PF: predicated region fallthrough
CT: control target
= control target key end

     0   :  { %s992_s21 = smov 0   ;;  %s994_s22 = smov 0   ;;  %s1136_s0 = inlined_call_operand.vmem [shape: bf16[2,256,4], index: 0, kind: input, shape index: {}]   ;;  %s1137_s1 = inlined_call_operand.vmem [shape: bf16[32,256], index: 1, kind: input, shape index: {}]   ;;  %s1138_s2 = inlined_call_operand.vmem [shape: f32[32,1], index: 2, kind: input, shape index: {}]   ;;  %s1139_s3 = inlined_call_operand.vmem [shape: bf16[48,32], index: 3, kind: input, shape index: {}]   ;;  %s1140_s4 = inlined_call_operand.vmem [shape: f32[48,1], index: 4, kind: input, shape index: {}]   ;;  %s1141_s5 = inlined_call_operand.vmem [shape: f32[2,32,4], index: 5, kind: output, shape index: {0}]   ;;  %s1142_s6 = inlined_call_operand.vmem [shape: f32[2,48,1], index: 6, kind: output, shape index: {1}]  }
   0x1   :  { %s996_s23 = smov 0  }
   0x2 LB: > { %s29_s24 = sadd.s32 1, %s948_s22  ;;  %p790_p0 = scmp.ge.s32.totalorder %s952_s23, 1  ;;  %s952_s23 = sphi %s996_s23, %s17_s23   ;;  %s948_s22 = sphi %s994_s22, %s1144_s22   ;;  %s944_s21 = sphi %s992_s21, %s1143_s21  }
   0x3   : > { %p31_p1 = scmp.ge.s32.totalorder %s29_s24, 2  ;;  %p234_p2 = scmp.lt.s32.totalorder %s952_s23, 3 }
   0x5   : > { %s1146_s24 = smov (%p31_p1, %s29_s24), 0  ;;  %p235_p3 = pnand %p790_p0, %p234_p2 }
   0x6   : > { %p275_p4 = scmp.lt.s32.totalorder (!%p235_p3), %s944_s21, 1  ;;  %v923_v0 = vld [vmem:[%s1137_s1 + $0x4] ss:$8 sps:$4 sm:$0xff] (!%p235_p3)   ;;  %v954_v1 = vmov (!%p235_p3), 0   ;;  %v344_v4 = vld [vmem:[%s1138_s2 + $0x10] sm:$0xff] (!%p235_p3)  ;;  %v345_v5 = vld [vmem:[%s1138_s2 + $0x18] sm:$0xff] (!%p235_p3) }
   0x7   : > { %238 = sbr.rel (%p235_p3) target bundleno = 670 (0x29e), region = 40  ;;  %903 = vset.pattern.permute.xlu0 (!%p235_p3), %v954_v1  ;;  %904 = vset.pattern.permute.xlu1 (!%p235_p3), %v954_v1  ;;  %v342_v2 = vld [vmem:[%s1138_s2] sm:$0xff] (!%p235_p3)  ;;  %v343_v3 = vld [vmem:[%s1138_s2 + $0x8] sm:$0xff] (!%p235_p3)  ;;  %v924_v23 = vld [vmem:[%s1137_s1 + $0x14] ss:$8 sps:$4 sm:$0xff] (!%p235_p3)   ;;  %vm301_vm0 = vcmask (!%p235_p3), 7168  }
   0x8   : > { %514 = vmatprep.mubr.bf16.mxu0 (!%p235_p3), %v923_v0  ;;  %348 = vperm.xlu0 (!%p235_p3), %903, %v342_v2   ;;  %v921_v22 = vld [vmem:[%s1137_s1] ss:$8 sps:$4 sm:$0xff] (!%p235_p3)   ;;  %v926_v24 = vld [vmem:[%s1137_s1 + $0x10] ss:$8 sps:$4 sm:$0xff] (!%p235_p3)   ;;  %v955_v25 = vmov (!%p235_p3), 0.0   ;;  %vm531_vm1 = vcmask (!%p235_p3), 31744  }
   0x9   : > { %358 = vperm.xlu1 (!%p235_p3), %904, %v344_v4   ;;  %302 = vst.msk [vmem:[#allocation2] sm:$0xff] (!%p235_p3), %vm301_vm0, %v955_v25  ;;  %303 = vst.msk [vmem:[#allocation2 + $0x8] sm:$0xff] (!%p235_p3), %vm301_vm0, %v955_v25  ;;  %859 = vmatprep.subr.bf16.mxu1 (!%p235_p3), %v955_v25  ;;  %vm956_vm2 = vmmov (!%p235_p3), 0   ;;  %v927_v4 = vld [vmem:[%s1139_s3] sm:$0xff] (!%p235_p3)   ;;  %vm597_vm3 = vcmask (!%p235_p3), 261120  }
   0xa   : > { %304 = vst.msk [vmem:[#allocation2 + $0x10] sm:$0xff] (!%p235_p3), %vm301_vm0, %v955_v25  ;;  %305 = vst.msk [vmem:[#allocation2 + $0x18] sm:$0xff] (!%p235_p3), %vm301_vm0, %v955_v25  ;;  %863 = vmatprep.mubr.msk.bf16.mxu1 (!%p235_p3), %vm956_vm2, %v955_v25 }
   0xc   : > { %353 = vperm.xlu0 (!%p235_p3), %903, %v343_v3  }
   0xd   : > { %363 = vperm.xlu1 (!%p235_p3), %904, %v345_v5   ;;  %v928_v5 = vld [vmem:[%s1139_s3 + $0x8] sm:$0xff] (!%p235_p3)  }
   0xe   : > { %s1148_s21 = smov (!%p275_p4, %s944_s21), 1 }
   0xf   : > { %s824_s9 = sshll.u32 %s1148_s21, 7  ;;  %s825_s25 = sshll.u32 %s1148_s21, 5 }
  0x10   : > { %s1031_s14 = scalar_lea.vmem %s1136_s0, %s824_s9  ;;  %s290_s28 = scalar_lea.vmem %s1141_s5, %s825_s25  ;;  %v536_v50 = vld [vmem:[#allocation2] sm:$0xff]  ;;  %v537_v52 = vld [vmem:[#allocation2 + $0x8] sm:$0xff] }
  0x11   : > { %v905_v6 = vld [vmem:[%s1031_s14 + $0x40] sm:$0xff]   ;;  %v907_v8 = vld [vmem:[%s1031_s14 + $0x48] sm:$0xff]   ;;  %v909_v10 = vld [vmem:[%s1031_s14 + $0x50] sm:$0xff]   ;;  %s875_s11 = smul.u32 48, %s1148_s21 }
  0x12   : > { %v906_v7 = vld [vmem:[%s1031_s14] sm:$0xff]   ;;  %826 = vmatprep.subr.bf16.mxu0 %v905_v6  ;;  %v908_v9 = vld [vmem:[%s1031_s14 + $0x8] sm:$0xff]   ;;  %v910_v11 = vld [vmem:[%s1031_s14 + $0x10] sm:$0xff]  }
  0x13   : > { %827 = vmatpush3.bf16.msra.mxu0 %v906_v7  ;;  %v911_v12 = vld [vmem:[%s1031_s14 + $0x58] sm:$0xff]   ;;  %v913_v14 = vld [vmem:[%s1031_s14 + $0x60] sm:$0xff]   ;;  %v915_v16 = vld [vmem:[%s1031_s14 + $0x68] sm:$0xff]   ;;  %s295_s16 = scalar_lea.vmem %s1142_s6, %s875_s11 }
  0x14   : > { %828 = vmatprep.subr.bf16.mxu0 %v907_v8  ;;  %v912_v13 = vld [vmem:[%s1031_s14 + $0x18] sm:$0xff]   ;;  %v914_v15 = vld [vmem:[%s1031_s14 + $0x20] sm:$0xff]   ;;  %v916_v17 = vld [vmem:[%s1031_s14 + $0x28] sm:$0xff]  }
  0x15   : > { %v917_v18 = vld [vmem:[%s1031_s14 + $0x70] sm:$0xff]   ;;  %v919_v20 = vld [vmem:[%s1031_s14 + $0x78] sm:$0xff]   ;;  %v576_v7 = vld [vmem:[%s1140_s4] sm:$0xff] }
  0x16   : > { %v918_v19 = vld [vmem:[%s1031_s14 + $0x30] sm:$0xff]   ;;  %v920_v21 = vld [vmem:[%s1031_s14 + $0x38] sm:$0xff]  }
  0x17   : > { %829 = vmatpush3.bf16.msra.mxu0 %v908_v9  ;;  %v538_v56 = vld [vmem:[#allocation2 + $0x10] sm:$0xff]  ;;  %v539_v59 = vld [vmem:[#allocation2 + $0x18] sm:$0xff]  ;;  %v577_v9 = vld [vmem:[%s1140_s4 + $0x8] sm:$0xff] }
  0x18   : > { %830 = vmatprep.subr.bf16.mxu0 %v909_v10  ;;  %v929_v6 = vld [vmem:[%s1139_s3 + $0x10] sm:$0xff]  }
  0x1b   : > { %831 = vmatpush3.bf16.msra.mxu0 %v910_v11 }
  0x1c   : > { %832 = vmatprep.subr.bf16.mxu0 %v911_v12 }
  0x1f   : > { %833 = vmatpush3.bf16.msra.mxu0 %v912_v13 }
  0x20   : > { %834 = vmatprep.subr.bf16.mxu0 %v913_v14 }
  0x23   : > { %835 = vmatpush3.bf16.msra.mxu0 %v914_v15  ;;  %v578_v15 = vld [vmem:[%s1140_s4 + $0x10] sm:$0xff] }
  0x24   : > { %836 = vmatprep.subr.bf16.mxu0 %v915_v16 }
  0x27   : > { %837 = vmatpush3.bf16.msra.mxu0 %v916_v17  ;;  %v579_v17 = vld [vmem:[%s1140_s4 + $0x18] sm:$0xff] }
  0x28   : > { %838 = vmatprep.subr.bf16.mxu0 %v917_v18 }
  0x2b   : > { %839 = vmatpush3.bf16.msra.mxu0 %v918_v19 }
  0x2c   : > { %840 = vmatprep.subr.bf16.mxu0 %v919_v20 }
  0x2f   : > { %841 = vmatpush3.bf16.msra.mxu0 %v920_v21 }
  0x32   : > { %515 = vmatmul.mubr.bf16.vlgmr.msra.gmra.mrb[0].mxu0 %v921_v22 }
  0x33   : > { %522 = vmatprep.mubr.bf16.mxu0 %v924_v23  ;;  %v580_v23 = vld [vmem:[%s1140_s4 + $0x20] sm:$0xff] }
  0x3a   : > { %523 = vmatmul.mubr.bf16.gmra.mrb[4].mxu0 %v926_v24 }
  0x87   : > { %v349_v26 = vpop.permute.xlu0 %348 }
  0x88   : > { %v359_v37 = vpop.permute.xlu1 %358 }
  0x8b   : > { %v354_v32 = vpop.permute.xlu0 %353 }
  0x8c   : > { %v364_v46 = vpop.permute.xlu1 %363 }
 0x105   : > { %v842_v27 = vpop.f32.mrb[0].mxu0 }
 0x106   : > { %v843_v28 = vpop.f32.mrb[1].mxu0 }
 0x107   : > { %v844_v29 = vadd.f32 %v843_v28, %v842_v27  ;;  %v845_v30 = vpop.f32.mrb[2].mxu0 }
 0x108   : > { %v846_v31 = vpop.f32.mrb[3].mxu0 }
 0x109   : > { %v847_v33 = vadd.f32 %v846_v31, %v845_v30  ;;  %v517_v34 = vadd.f32 %v844_v29, %v349_v26 }
 0x10b   : > { %v520_v35 = vadd.f32 %v847_v33, %v354_v32  ;;  %v540_v36 = vsel %vm531_vm1, %v517_v34, 0.0  ;;  %532 = vst.msk [vmem:[%s290_s28] sm:$0xff] %vm531_vm1, %v517_v34 }
 0x10c   : > { %541 = vadd.xlane.f32.xlu0 %v540_v36 }
 0x10d   : > { %533 = vst.msk [vmem:[%s290_s28 + $0x8] sm:$0xff] %vm531_vm1, %v520_v35  ;;  %v848_v38 = vpop.f32.mrb[4].mxu0  ;;  %v543_v39 = vsel %vm531_vm1, %v520_v35, 0.0 }
 0x10e   : > { %v849_v40 = vpop.f32.mrb[5].mxu0  ;;  %544 = vadd.xlane.f32.xlu1 %v543_v39 }
 0x10f   : > { %v850_v41 = vadd.f32 %v849_v40, %v848_v38  ;;  %v851_v42 = vpop.f32.mrb[6].mxu0 }
 0x110   : > { %v852_v43 = vpop.f32.mrb[7].mxu0 }
 0x111   : > { %v853_v44 = vadd.f32 %v852_v43, %v851_v42  ;;  %v525_v45 = vadd.f32 %v850_v41, %v359_v37 }
 0x113   : > { %534 = vst.msk [vmem:[%s290_s28 + $0x10] sm:$0xff] %vm531_vm1, %v525_v45  ;;  %v546_v47 = vsel %vm531_vm1, %v525_v45, 0.0  ;;  %v528_v48 = vadd.f32 %v853_v44, %v364_v46 }
 0x114   : > { %547 = vadd.xlane.f32.xlu0 %v546_v47 }
 0x115   : > { %535 = vst.msk [vmem:[%s290_s28 + $0x18] sm:$0xff] %vm531_vm1, %v528_v48  ;;  %v549_v49 = vsel %vm531_vm1, %v528_v48, 0.0 }
 0x118   : > { %550 = vadd.xlane.f32.xlu0 %v549_v49 }
 0x199   : > { %v542_v51 = vpop.xlane.xlu0 %541 }
 0x19a   : > { %v552_v53 = vadd.f32 %v542_v51, %v536_v50 }
 0x19b   : > { %v545_v54 = vpop.xlane.xlu1 %544 }
 0x19c   : > { %557 = vst.msk [vmem:[#allocation2] sm:$0xff] %vm301_vm0, %v552_v53  ;;  %v553_v55 = vadd.f32 %v545_v54, %v537_v52 }
 0x19e   : > { %558 = vst.msk [vmem:[#allocation2 + $0x8] sm:$0xff] %vm301_vm0, %v553_v55 }
 0x1a1   : > { %v548_v57 = vpop.xlane.xlu0 %547 }
 0x1a2   : > { %v554_v58 = vadd.f32 %v548_v57, %v538_v56 }
 0x1a3   : > { %v564_v61 = vld [vmem:[#allocation2] sm:$0xff] }
 0x1a4   : > { %559 = vst.msk [vmem:[#allocation2 + $0x10] sm:$0xff] %vm301_vm0, %v554_v58 }
 0x1a5   : > { %v551_v60 = vpop.xlane.xlu0 %550  ;;  %v565_v62 = vld [vmem:[#allocation2 + $0x8] sm:$0xff] }
 0x1a6   : > { %v555_v63 = vadd.f32 %v551_v60, %v539_v59  ;;  %v568_v0 = vpack.c.bf16 %v565_v62, %v564_v61 }
 0x1a8   : > { %560 = vst.msk [vmem:[#allocation2 + $0x18] sm:$0xff] %vm301_vm0, %v555_v63  ;;  %860 = vmatpush3.bf16.msra.mxu1 %v568_v0 }
 0x1a9   : > { %861 = vmatprep.subr.bf16.mxu1 %v955_v25 }
 0x1ab   : > { %v566_v1 = vld [vmem:[#allocation2 + $0x10] sm:$0xff] }
 0x1af   : > { %v567_v2 = vld [vmem:[#allocation2 + $0x18] sm:$0xff] }
 0x1b0   : > { %v569_v3 = vpack.c.bf16 %v567_v2, %v566_v1 }
 0x1b2   : > { %862 = vmatpush3.bf16.msra.mxu1 %v569_v3 }
 0x1b5   : > { %864 = vmatmul.mubr.msk.bf16.vlgmr.msra.gmra.mrb[0].mxu1 %vm597_vm3, %v927_v4 }
 0x1b6   : > { %867 = vmatprep.mubr.msk.bf16.mxu1 %vm956_vm2, %v955_v25 }
 0x1bd   : > { %868 = vmatmul.mubr.msk.bf16.gmra.mrb[4].mxu1 %vm597_vm3, %v928_v5 }
 0x1be   : > { %871 = vmatprep.mubr.msk.bf16.mxu1 %vm956_vm2, %v955_v25  ;;  %v581_v25 = vld [vmem:[%s1140_s4 + $0x28] sm:$0xff] }
 0x1c5   : > { %872 = vmatmul.mubr.msk.bf16.gmra.mrb[8].mxu1 %vm597_vm3, %v929_v6 }
 0x288   : > { %v641_v8 = vpop.f32.mrb[0].mxu1 }
 0x289   : > { %v642_v10 = vadd.f32 %v641_v8, %v576_v7  ;;  %v865_v11 = vpop.f32.mrb[1].mxu1 }
 0x28a   : > { %v644_v12 = vpop.f32.mrb[2].mxu1 }
 0x28b   : > { %664 = vst.msk [vmem:[%s295_s16] sm:$0xff] %vm301_vm0, %v642_v10  ;;  %v645_v13 = vadd.f32 %v644_v12, %v577_v9  ;;  %v866_v14 = vpop.f32.mrb[3].mxu1 }
 0x28d   : > { %665 = vst.msk [vmem:[%s295_s16 + $0x8] sm:$0xff] %vm301_vm0, %v645_v13 }
 0x290   : > { %v649_v16 = vpop.f32.mrb[4].mxu1 }
 0x291   : > { %v650_v18 = vadd.f32 %v649_v16, %v578_v15  ;;  %v869_v19 = vpop.f32.mrb[5].mxu1 }
 0x292   : > { %v652_v20 = vpop.f32.mrb[6].mxu1 }
 0x293   : > { %666 = vst.msk [vmem:[%s295_s16 + $0x10] sm:$0xff] %vm301_vm0, %v650_v18  ;;  %v653_v21 = vadd.f32 %v652_v20, %v579_v17  ;;  %v870_v22 = vpop.f32.mrb[7].mxu1 }
 0x295   : > { %667 = vst.msk [vmem:[%s295_s16 + $0x18] sm:$0xff] %vm301_vm0, %v653_v21 }
 0x298   : > { %v657_v24 = vpop.f32.mrb[8].mxu1 }
 0x299   : > { %v658_v26 = vadd.f32 %v657_v24, %v580_v23  ;;  %v873_v27 = vpop.f32.mrb[9].mxu1 }
 0x29a   : > { %v660_v28 = vpop.f32.mrb[10].mxu1 }
 0x29b   : > { %668 = vst.msk [vmem:[%s295_s16 + $0x20] sm:$0xff] %vm301_vm0, %v658_v26  ;;  %v661_v29 = vadd.f32 %v660_v28, %v581_v25  ;;  %v874_v30 = vpop.f32.mrb[11].mxu1 }
 0x29d   : > { %669 = vst.msk [vmem:[%s295_s16 + $0x28] sm:$0xff] %vm301_vm0, %v661_v29 }
 0x29e PF: > { %s17_s23 = sadd.s32 1, %s952_s23   ;;  %s1143_s21 = smov %s948_s22 }
 0x29f   : > { %p14_p5 = scmp.ge.s32.totalorder %s17_s23, 4   ;;  %s1144_s22 = smov %s1146_s24 }
 0x2a1   :  { %16 = sbr.rel (!%p14_p5) target bundleno = 2 (0x2), region = 90 }

</bundles_post_ra>
